<compile_context>
chip_gen: v5e
topology: v5e:2x2
jax: 0.10.0
libtpu: 0.0.40
codegen_flags: <defaults>
</compile_context>

<pallas_src>
import functools

import jax
import jax.numpy as jnp
from jax.experimental import pallas as pl
from jax.experimental.pallas import tpu as pltpu


def _linear_kernel(x_ref, w_ref, b_ref, o_ref):
    # x_ref: [tb, F] bf16, w_ref: [F, O_pad] bf16, b_ref: [1, O_pad] f32,
    # o_ref: [tb, O_pad] f32
    acc = jnp.dot(x_ref[...], w_ref[...], preferred_element_type=jnp.float32)
    o_ref[...] = (acc + b_ref[...]).astype(o_ref.dtype)


def _round_up(n, m):
    return (n + m - 1) // m * m


def prepare_classifier_params(w_t, b, compute_dtype=jnp.bfloat16):
    """One-time prep: pad output (lane) dim to a multiple of 128, cast W to bf16.

    w_t: [F, O] (transposed PyTorch weight), b: [O].
    Returns (w_pad [F, O_pad] bf16, b_pad [1, O_pad] f32, O).
    """
    F, O = w_t.shape
    O_pad = _round_up(O, 128)
    w_pad = jnp.zeros((F, O_pad), compute_dtype).at[:, :O].set(
        w_t.astype(compute_dtype))
    b_pad = jnp.zeros((1, O_pad), jnp.float32).at[:, :O].set(
        b.astype(jnp.float32))
    return w_pad, b_pad, O


@functools.partial(jax.jit, static_argnames=("n_output", "compute_dtype"))
def classifier_forward(x, w_pad, b_pad, n_output, compute_dtype=jnp.bfloat16):
    """y = x @ W.T + b  (equivalent to torch.nn.Linear(F, O)(x)), f32 output."""
    B, F = x.shape
    F2, O_pad = w_pad.shape
    assert F == F2 and b_pad.shape == (1, O_pad) and n_output <= O_pad

    # Batch tile: whole (padded) batch if small, else 256-row slabs.
    B_pad = _round_up(max(B, 8), 8)
    tb = B_pad if B_pad <= 256 else 256
    B_pad = _round_up(B_pad, tb)
    nb = B_pad // tb

    x_c = x.astype(compute_dtype)
    if B_pad != B:
        x_c = jnp.zeros((B_pad, F), compute_dtype).at[:B, :].set(x_c)

    itemsize = jnp.dtype(compute_dtype).itemsize
    bytes_accessed = (
        B_pad * F * itemsize          # x
        + F * O_pad * itemsize        # weight (dominant stream)
        + O_pad * 4                   # bias
        + B_pad * O_pad * 4           # output
    )

    y_pad = pl.pallas_call(
        _linear_kernel,
        out_shape=jax.ShapeDtypeStruct((B_pad, O_pad), jnp.float32),
        grid=(nb,),
        in_specs=[
            pl.BlockSpec((tb, F), lambda i: (i, 0)),
            pl.BlockSpec((F, O_pad), lambda i: (0, 0)),   # resident across grid
            pl.BlockSpec((1, O_pad), lambda i: (0, 0)),   # resident across grid
        ],
        out_specs=pl.BlockSpec((tb, O_pad), lambda i: (i, 0)),
        compiler_params=pltpu.CompilerParams(
            dimension_semantics=("parallel",),
        ),
        cost_estimate=pl.CostEstimate(
            flops=2 * B_pad * F * O_pad,
            transcendentals=0,
            bytes_accessed=int(bytes_accessed),
        ),
    )(x_c, w_pad, b_pad)

    # TODO(synk): for a tight inference loop, fuse with the producer layer so
    # the per-call weight DMA (the dominant cost at this size) is amortized.
    return y_pad[:B, :n_output]


def init_classifier_params(key, n_feature=512, n_output=250, dtype=jnp.float32):
    """Deterministic init mimicking nn.Linear default (uniform +/- 1/sqrt(fan_in))."""
    k_w, k_b = jax.random.split(key)
    bound = 1.0 / jnp.sqrt(jnp.float32(n_feature))
    # PyTorch stores weight as [O, F]; we keep the transposed [F, O] for the kernel.
    w_t = jax.random.uniform(k_w, (n_feature, n_output), dtype, -bound, bound)
    b = jax.random.uniform(k_b, (n_output,), dtype, -bound, bound)
    return w_t, b


if __name__ == "__main__":
    key = jax.random.PRNGKey(0)
    k_x, k_p = jax.random.split(key)

    n_feature, n_output = 512, 250
    batch = 8

    x = jax.random.normal(k_x, (batch, n_feature), dtype=jnp.float32)
    w_t, b = init_classifier_params(k_p, n_feature, n_output)

    # One-time param prep (pad O 250->256, cast to bf16).
    w_pad, b_pad, O = prepare_classifier_params(w_t, b)

    y = classifier_forward(x, w_pad, b_pad, O)
    y = jax.block_until_ready(y)
    assert y.shape == (batch, n_output)

    # Reference 1: same bf16 compute path in plain JAX (tight tolerance).
    y_ref_bf16 = (
        jnp.dot(x.astype(jnp.bfloat16), w_t.astype(jnp.bfloat16),
                preferred_element_type=jnp.float32)
        + b.astype(jnp.float32)
    )
    assert jnp.allclose(y, y_ref_bf16, atol=1e-3, rtol=1e-3)

    # Reference 2: original full-f32 Linear semantics (bf16-rounding tolerance).
    y_ref_f32 = x @ w_t + b
    assert jnp.allclose(y, y_ref_f32, atol=2e-2, rtol=2e-2)

    print("KERNEL_OK")
</pallas_src>

<mosaic_0001>
module attributes {stable_mosaic.version = 11 : i64} {
  func.func @_linear_kernel(%arg0: i32, %arg1: memref<8x512xbf16, #tpu.memory_space<vmem>>, %arg2: memref<512x256xbf16, #tpu.memory_space<vmem>>, %arg3: memref<1x256xf32, #tpu.memory_space<vmem>>, %arg4: memref<8x256xf32, #tpu.memory_space<vmem>>) attributes {dimension_semantics = [#tpu.dimension_semantics<parallel>], iteration_bounds = array<i64: 1>, scalar_prefetch = 0 : i64, scratch_operands = 0 : i64, tpu.core_type = #tpu.core_type<tc>, window_params = [{transform_indices = @transform_0, window_bounds = array<i64: 8, 512>}, {pipeline_mode = #tpu.pipeline_mode<synchronous>, transform_indices = @transform_1, window_bounds = array<i64: 512, 256>}, {pipeline_mode = #tpu.pipeline_mode<synchronous>, transform_indices = @transform_2, window_bounds = array<i64: 1, 256>}, {transform_indices = @transform_3, window_bounds = array<i64: 8, 256>}]} {
    %c0 = arith.constant 0 : index
    %c0_0 = arith.constant 0 : index
    %0 = vector.load %arg1[%c0, %c0_0] : memref<8x512xbf16, #tpu.memory_space<vmem>>, vector<8x512xbf16>
    %c0_1 = arith.constant 0 : index
    %c0_2 = arith.constant 0 : index
    %1 = vector.load %arg2[%c0_1, %c0_2] : memref<512x256xbf16, #tpu.memory_space<vmem>>, vector<512x256xbf16>
    %cst = arith.constant dense<0.000000e+00> : vector<8x256xf32>
    %2 = tpu.matmul %0, %1, %cst {dimension_numbers = #tpu.dot_dimension_numbers<[1], [0], [0], [1], [0, 0, 1, 1], [], []>} : vector<8x512xbf16>, vector<512x256xbf16>, vector<8x256xf32> -> vector<8x256xf32>
    %c0_3 = arith.constant 0 : index
    %c0_4 = arith.constant 0 : index
    %3 = vector.load %arg3[%c0_3, %c0_4] : memref<1x256xf32, #tpu.memory_space<vmem>>, vector<1x256xf32>
    %4 = vector.broadcast %3 : vector<1x256xf32> to vector<8x256xf32>
    %5 = arith.addf %2, %4 : vector<8x256xf32>
    %c0_5 = arith.constant 0 : index
    %c0_6 = arith.constant 0 : index
    %6 = vector.load %arg4[%c0_5, %c0_6] : memref<8x256xf32, #tpu.memory_space<vmem>>, vector<8x256xf32>
    tpu.vector_store %arg4[%c0_5, %c0_6], %5 {strides = array<i32>} : memref<8x256xf32, #tpu.memory_space<vmem>>, vector<8x256xf32>,
    return
  }
  func.func @transform_0(%arg0: i32) -> (i32, i32) {
    %c0_i32 = arith.constant 0 : i32
    %c0_i32_0 = arith.constant 0 : i32
    return %arg0, %c0_i32 : i32, i32
  }
  func.func @transform_1(%arg0: i32) -> (i32, i32) {
    %c0_i32 = arith.constant 0 : i32
    %c0_i32_0 = arith.constant 0 : i32
    %c0_i32_1 = arith.constant 0 : i32
    return %c0_i32, %c0_i32_0 : i32, i32
  }
  func.func @transform_2(%arg0: i32) -> (i32, i32) {
    %c0_i32 = arith.constant 0 : i32
    %c0_i32_0 = arith.constant 0 : i32
    %c0_i32_1 = arith.constant 0 : i32
    return %c0_i32, %c0_i32_0 : i32, i32
  }
  func.func @transform_3(%arg0: i32) -> (i32, i32) {
    %c0_i32 = arith.constant 0 : i32
    %c0_i32_0 = arith.constant 0 : i32
    return %arg0, %c0_i32 : i32, i32
  }
}

</mosaic_0001>

<bundles_post_ra>
// kernel: classifier_forward.1
= control target key start
LH: loop header
LB: loop body
LE: loop exit
PB: predicated region body
PF: predicated region fallthrough
CT: control target
= control target key end

     0   :  { %8 = vsyncpa [#allocation3], 0  ;;  %s991_s0 = inlined_call_operand.vmem [shape: bf16[8,512], index: 0, kind: input, shape index: {}]   ;;  %s992_s1 = inlined_call_operand.hbm [shape: bf16[512,256], index: 1, kind: input, shape index: {}]   ;;  %s993_s2 = inlined_call_operand.vmem [shape: f32[1,256], index: 2, kind: input, shape index: {}]   ;;  %s994_s3 = inlined_call_operand.hbm [shape: f32[8,256], index: 3, kind: output, shape index: {}]  }
   0x1   :  { %9 = vsyncpa [#allocation4], 0  ;;  %s16_s14 = sshll.u32 %s992_s1, 4  ;;  %s936_s15 = smov [#allocation2]   ;;  %s17_s14 = int_to_ptr.hbm [resolvable:$true] %s16_s14 }
   0x2   :  { %s18_s16 = sshll.u32 %s936_s15, 4  ;;  %s937_s17 = smov 128   ;;  %s19_s16 = int_to_ptr.vmem [resolvable:$true] %s18_s16 }
   0x3   :  { %s938_s18 = smov 8  }
   0x4   :  { %24 = dma.hbm_to_vmem [thread:$0]  %s17_s14, 8192, %s19_s16, [#allocation3], %s937_s17, %s937_s17, %s938_s18  }
   0x5   :  { %932 = dma.done.wait [#allocation3], 8192  }
   0x6   :  { %933 = vsyncadd [#allocation3], 4294959104  ;;  %v618_v0 = vld [vmem:[#allocation2 + $0x70] sm:$0xf]  ;;  %v831_v1 = vld [vmem:[#allocation2 + $0x74] sm:$0xf0] }
   0x7   :  { %v682_v2 = vld [vmem:[#allocation2 + $0xf0] sm:$0xf]  ;;  %v619_v3 = vor.u32 %v831_v1, %v618_v0  ;;  %v847_v4 = vld [vmem:[#allocation2 + $0xf4] sm:$0xf0]  ;;  %v610_v11 = vld [vmem:[#allocation2 + $0x60] sm:$0xf] }
   0x8   :  { %v746_v5 = vld [vmem:[#allocation2 + $0x170] sm:$0xf]  ;;  %v863_v6 = vld [vmem:[#allocation2 + $0x174] sm:$0xf0]  ;;  %v683_v7 = vor.u32 %v847_v4, %v682_v2  ;;  %v829_v13 = vld [vmem:[#allocation2 + $0x64] sm:$0xf0] }
   0x9   :  { %v747_v8 = vor.u32 %v863_v6, %v746_v5  ;;  %v810_v9 = vld [vmem:[#allocation2 + $0x1f0] sm:$0xf]  ;;  %v879_v10 = vld [vmem:[#allocation2 + $0x1f4] sm:$0xf0]  ;;  %437 = vmatpush.bf16.msra.mxu0 %v619_v3  ;;  %v674_v14 = vld [vmem:[#allocation2 + $0xe0] sm:$0xf]  ;;  %v611_v16 = vor.u32 %v829_v13, %v610_v11 }
   0xa   :  { %v811_v12 = vor.u32 %v879_v10, %v810_v9  ;;  %v845_v15 = vld [vmem:[#allocation2 + $0xe4] sm:$0xf0]  ;;  %450 = vmatpush.bf16.msra.mxu1 %v683_v7  ;;  %v738_v18 = vld [vmem:[#allocation2 + $0x160] sm:$0xf]  ;;  %v602_v23 = vld [vmem:[#allocation2 + $0x50] sm:$0xf] }
   0xb   :  { %463 = vmatpush.bf16.msra.mxu2 %v747_v8  ;;  %v675_v17 = vor.u32 %v845_v15, %v674_v14  ;;  %v861_v19 = vld [vmem:[#allocation2 + $0x164] sm:$0xf0]  ;;  %v802_v20 = vld [vmem:[#allocation2 + $0x1e0] sm:$0xf]  ;;  %v827_v24 = vld [vmem:[#allocation2 + $0x54] sm:$0xf0] }
   0xc   :  { %476 = vmatpush.bf16.msra.mxu3 %v811_v12  ;;  %v739_v21 = vor.u32 %v861_v19, %v738_v18  ;;  %v877_v22 = vld [vmem:[#allocation2 + $0x1e4] sm:$0xf0]  ;;  %v666_v26 = vld [vmem:[#allocation2 + $0xd0] sm:$0xf]  ;;  %v843_v27 = vld [vmem:[#allocation2 + $0xd4] sm:$0xf0]  ;;  %v603_v29 = vor.u32 %v827_v24, %v602_v23 }
   0xd   :  { %v803_v25 = vor.u32 %v877_v22, %v802_v20  ;;  %v730_v28 = vld [vmem:[#allocation2 + $0x150] sm:$0xf]  ;;  %438 = vmatpush.bf16.msra.mxu0 %v611_v16  ;;  %v859_v30 = vld [vmem:[#allocation2 + $0x154] sm:$0xf0]  ;;  %v667_v33 = vor.u32 %v843_v27, %v666_v26  ;;  %v594_v35 = vld [vmem:[#allocation2 + $0x40] sm:$0xf] }
   0xe   :  { %v794_v31 = vld [vmem:[#allocation2 + $0x1d0] sm:$0xf]  ;;  %v875_v32 = vld [vmem:[#allocation2 + $0x1d4] sm:$0xf0]  ;;  %451 = vmatpush.bf16.msra.mxu1 %v675_v17  ;;  %v731_v34 = vor.u32 %v859_v30, %v730_v28  ;;  %v825_v36 = vld [vmem:[#allocation2 + $0x44] sm:$0xf0] }
   0xf   :  { %464 = vmatpush.bf16.msra.mxu2 %v739_v21  ;;  %v658_v37 = vld [vmem:[#allocation2 + $0xc0] sm:$0xf]  ;;  %v795_v38 = vor.u32 %v875_v32, %v794_v31  ;;  %v841_v39 = vld [vmem:[#allocation2 + $0xc4] sm:$0xf0]  ;;  %v595_v44 = vor.u32 %v825_v36, %v594_v35  ;;  %v586_v47 = vld [vmem:[#allocation2 + $0x30] sm:$0xf] }
  0x10   :  { %477 = vmatpush.bf16.msra.mxu3 %v803_v25  ;;  %v722_v40 = vld [vmem:[#allocation2 + $0x140] sm:$0xf]  ;;  %v857_v41 = vld [vmem:[#allocation2 + $0x144] sm:$0xf0]  ;;  %v659_v45 = vor.u32 %v841_v39, %v658_v37  ;;  %v823_v48 = vld [vmem:[#allocation2 + $0x34] sm:$0xf0] }
  0x11   :  { %v786_v42 = vld [vmem:[#allocation2 + $0x1c0] sm:$0xf]  ;;  %v873_v43 = vld [vmem:[#allocation2 + $0x1c4] sm:$0xf0]  ;;  %439 = vmatpush.bf16.msra.mxu0 %v603_v29  ;;  %v723_v46 = vor.u32 %v857_v41, %v722_v40  ;;  %v650_v49 = vld [vmem:[#allocation2 + $0xb0] sm:$0xf]  ;;  %v587_v56 = vor.u32 %v823_v48, %v586_v47 }
  0x12   :  { %452 = vmatpush.bf16.msra.mxu1 %v667_v33  ;;  %v787_v50 = vor.u32 %v873_v43, %v786_v42  ;;  %v839_v51 = vld [vmem:[#allocation2 + $0xb4] sm:$0xf0]  ;;  %v714_v52 = vld [vmem:[#allocation2 + $0x130] sm:$0xf]  ;;  %v578_v59 = vld [vmem:[#allocation2 + $0x20] sm:$0xf] }
  0x13   :  { %465 = vmatpush.bf16.msra.mxu2 %v731_v34  ;;  %v855_v53 = vld [vmem:[#allocation2 + $0x134] sm:$0xf0]  ;;  %v778_v54 = vld [vmem:[#allocation2 + $0x1b0] sm:$0xf]  ;;  %v651_v57 = vor.u32 %v839_v51, %v650_v49  ;;  %v821_v60 = vld [vmem:[#allocation2 + $0x24] sm:$0xf0] }
  0x14   :  { %478 = vmatpush.bf16.msra.mxu3 %v795_v38  ;;  %v871_v55 = vld [vmem:[#allocation2 + $0x1b4] sm:$0xf0]  ;;  %v715_v58 = vor.u32 %v855_v53, %v714_v52  ;;  %v642_v61 = vld [vmem:[#allocation2 + $0xa0] sm:$0xf]  ;;  %v837_v63 = vld [vmem:[#allocation2 + $0xa4] sm:$0xf0]  ;;  %v579_v4 = vor.u32 %v821_v60, %v578_v59 }
  0x15   :  { %440 = vmatpush.bf16.msra.mxu0 %v595_v44  ;;  %v779_v62 = vor.u32 %v871_v55, %v778_v54  ;;  %v706_v0 = vld [vmem:[#allocation2 + $0x120] sm:$0xf]  ;;  %v853_v1 = vld [vmem:[#allocation2 + $0x124] sm:$0xf0]  ;;  %v643_v5 = vor.u32 %v837_v63, %v642_v61  ;;  %v570_v7 = vld [vmem:[#allocation2 + $0x10] sm:$0xf] }
  0x16   :  { %453 = vmatpush.bf16.msra.mxu1 %v659_v45  ;;  %v770_v2 = vld [vmem:[#allocation2 + $0x1a0] sm:$0xf]  ;;  %v869_v3 = vld [vmem:[#allocation2 + $0x1a4] sm:$0xf0]  ;;  %v707_v6 = vor.u32 %v853_v1, %v706_v0  ;;  %v819_v8 = vld [vmem:[#allocation2 + $0x14] sm:$0xf0] }
  0x17   :  { %466 = vmatpush.bf16.msra.mxu2 %v723_v46  ;;  %v634_v9 = vld [vmem:[#allocation2 + $0x90] sm:$0xf]  ;;  %v771_v10 = vor.u32 %v869_v3, %v770_v2  ;;  %v835_v11 = vld [vmem:[#allocation2 + $0x94] sm:$0xf0]  ;;  %v571_v16 = vor.u32 %v819_v8, %v570_v7  ;;  %v562_v17 = vld [vmem:[#allocation2] sm:$0xf] }
  0x18   :  { %479 = vmatpush.bf16.msra.mxu3 %v787_v50  ;;  %v698_v12 = vld [vmem:[#allocation2 + $0x110] sm:$0xf]  ;;  %v851_v13 = vld [vmem:[#allocation2 + $0x114] sm:$0xf0]  ;;  %v817_v18 = vld [vmem:[#allocation2 + $0x4] sm:$0xf0]  ;;  %v635_v20 = vor.u32 %v835_v11, %v634_v9 }
  0x19   :  { %441 = vmatpush.bf16.msra.mxu0 %v587_v56  ;;  %v762_v14 = vld [vmem:[#allocation2 + $0x190] sm:$0xf]  ;;  %v867_v15 = vld [vmem:[#allocation2 + $0x194] sm:$0xf0]  ;;  %v626_v19 = vld [vmem:[#allocation2 + $0x80] sm:$0xf]  ;;  %v699_v21 = vor.u32 %v851_v13, %v698_v12  ;;  %v563_v32 = vor.u32 %v817_v18, %v562_v17 }
  0x1a   :  { %454 = vmatpush.bf16.msra.mxu1 %v651_v57  ;;  %v833_v22 = vld [vmem:[#allocation2 + $0x84] sm:$0xf0]  ;;  %v690_v23 = vld [vmem:[#allocation2 + $0x100] sm:$0xf]  ;;  %v763_v25 = vor.u32 %v867_v15, %v762_v14  ;;  %v830_v28 = vld [vmem:[#allocation2 + $0x74] sm:$0xf] }
  0x1b   :  { %467 = vmatpush.bf16.msra.mxu2 %v715_v58  ;;  %v849_v24 = vld [vmem:[#allocation2 + $0x104] sm:$0xf0]  ;;  %v754_v26 = vld [vmem:[#allocation2 + $0x180] sm:$0xf]  ;;  %v620_v29 = vld [vmem:[#allocation2 + $0x78] sm:$0xf0]  ;;  %v627_v37 = vor.u32 %v833_v22, %v626_v19 }
  0x1c   :  { %480 = vmatpush.bf16.msra.mxu3 %v779_v62  ;;  %v865_v27 = vld [vmem:[#allocation2 + $0x184] sm:$0xf0]  ;;  %v846_v30 = vld [vmem:[#allocation2 + $0xf4] sm:$0xf]  ;;  %v684_v33 = vld [vmem:[#allocation2 + $0xf8] sm:$0xf0]  ;;  %v691_v38 = vor.u32 %v849_v24, %v690_v23  ;;  %v623_v43 = vor.u32 %v830_v28, %v620_v29 }
  0x1d   :  { %442 = vmatpush.bf16.msra.mxu0 %v579_v4  ;;  %v32_v31 = vld [vmem:[%s991_s0 + $0x8] sm:$0xff]  ;;  %v862_v34 = vld [vmem:[#allocation2 + $0x174] sm:$0xf]  ;;  %v748_v35 = vld [vmem:[#allocation2 + $0x178] sm:$0xf0]  ;;  %v755_v42 = vor.u32 %v865_v27, %v754_v26  ;;  %v687_v45 = vor.u32 %v846_v30, %v684_v33  ;;  %s550_s26 = sshll.u32 %s994_s3, 4  ;;  %s551_s26 = int_to_ptr.hbm [resolvable:$true] %s550_s26 }
  0x1e   :  { %455 = vmatpush.bf16.msra.mxu1 %v643_v5  ;;  %v107_v36 = vunpack.c.l.b16 %v32_v31  ;;  %v878_v39 = vld [vmem:[#allocation2 + $0x1f4] sm:$0xf]  ;;  %v812_v40 = vld [vmem:[#allocation2 + $0x1f8] sm:$0xf0]  ;;  %v108_v41 = vunpack.c.h.b16 %v32_v31  ;;  %v31_v44 = vld [vmem:[%s991_s0] sm:$0xff]  ;;  %v751_v46 = vor.u32 %v862_v34, %v748_v35 }
  0x1f   :  { %468 = vmatpush.bf16.msra.mxu2 %v707_v6  ;;  %v828_v47 = vld [vmem:[#allocation2 + $0x64] sm:$0xf]  ;;  %v612_v48 = vld [vmem:[#allocation2 + $0x68] sm:$0xf0]  ;;  %v105_v50 = vunpack.c.l.b16 %v31_v44  ;;  %v106_v51 = vunpack.c.h.b16 %v31_v44  ;;  %v815_v52 = vor.u32 %v878_v39, %v812_v40  ;;  %v826_v1 = vld [vmem:[#allocation2 + $0x54] sm:$0xf] }
  0x20   :  { %481 = vmatpush.bf16.msra.mxu3 %v771_v10  ;;  %v844_v49 = vld [vmem:[#allocation2 + $0xe4] sm:$0xf]  ;;  %v676_v53 = vld [vmem:[#allocation2 + $0xe8] sm:$0xf0]  ;;  %v969_v56 = vpack.c.b16 %v107_v36, %v107_v36  ;;  %v971_v59 = vpack.c.b16 %v108_v41, %v108_v41  ;;  %v615_v61 = vor.u32 %v828_v47, %v612_v48  ;;  %v604_v2 = vld [vmem:[#allocation2 + $0x58] sm:$0xf0] }
  0x21   :  { %443 = vmatpush.bf16.msra.mxu0 %v571_v16  ;;  %v860_v54 = vld [vmem:[#allocation2 + $0x164] sm:$0xf]  ;;  %v740_v55 = vld [vmem:[#allocation2 + $0x168] sm:$0xf0]  ;;  %v973_v60 = vpack.c.b16 %v105_v50, %v105_v50  ;;  %v975_v62 = vpack.c.b16 %v106_v51, %v106_v51  ;;  %v679_v63 = vor.u32 %v844_v49, %v676_v53  ;;  %v842_v3 = vld [vmem:[#allocation2 + $0xd4] sm:$0xf]  ;;  %v607_v10 = vor.u32 %v826_v1, %v604_v2 }
  0x22   :  { %456 = vmatpush.bf16.msra.mxu1 %v635_v20  ;;  %v876_v57 = vld [vmem:[#allocation2 + $0x1e4] sm:$0xf]  ;;  %v804_v58 = vld [vmem:[#allocation2 + $0x1e8] sm:$0xf0]  ;;  %v743_v0 = vor.u32 %v860_v54, %v740_v55  ;;  %v668_v5 = vld [vmem:[#allocation2 + $0xd8] sm:$0xf0] }
  0x23   :  { %469 = vmatpush.bf16.msra.mxu2 %v699_v21  ;;  %v807_v4 = vor.u32 %v876_v57, %v804_v58  ;;  %v858_v6 = vld [vmem:[#allocation2 + $0x154] sm:$0xf]  ;;  %v732_v7 = vld [vmem:[#allocation2 + $0x158] sm:$0xf0]  ;;  %v671_v11 = vor.u32 %v842_v3, %v668_v5  ;;  %v824_v13 = vld [vmem:[#allocation2 + $0x44] sm:$0xf] }
  0x24   :  { %482 = vmatpush.bf16.msra.mxu3 %v763_v25  ;;  %v874_v8 = vld [vmem:[#allocation2 + $0x1d4] sm:$0xf]  ;;  %v796_v9 = vld [vmem:[#allocation2 + $0x1d8] sm:$0xf0]  ;;  %v735_v12 = vor.u32 %v858_v6, %v732_v7  ;;  %v596_v14 = vld [vmem:[#allocation2 + $0x48] sm:$0xf0] }
  0x25   :  { %444 = vmatpush.bf16.msra.mxu0 %v563_v32  ;;  %v840_v15 = vld [vmem:[#allocation2 + $0xc4] sm:$0xf]  ;;  %v799_v16 = vor.u32 %v874_v8, %v796_v9  ;;  %v660_v17 = vld [vmem:[#allocation2 + $0xc8] sm:$0xf0]  ;;  %v599_v22 = vor.u32 %v824_v13, %v596_v14  ;;  %v822_v25 = vld [vmem:[#allocation2 + $0x34] sm:$0xf] }
  0x26   :  { %457 = vmatpush.bf16.msra.mxu1 %v627_v37  ;;  %v856_v18 = vld [vmem:[#allocation2 + $0x144] sm:$0xf]  ;;  %v724_v19 = vld [vmem:[#allocation2 + $0x148] sm:$0xf0]  ;;  %v663_v23 = vor.u32 %v840_v15, %v660_v17  ;;  %v588_v26 = vld [vmem:[#allocation2 + $0x38] sm:$0xf0] }
  0x27   :  { %470 = vmatpush.bf16.msra.mxu2 %v691_v38  ;;  %v872_v20 = vld [vmem:[#allocation2 + $0x1c4] sm:$0xf]  ;;  %v788_v21 = vld [vmem:[#allocation2 + $0x1c8] sm:$0xf0]  ;;  %v727_v24 = vor.u32 %v856_v18, %v724_v19  ;;  %v838_v27 = vld [vmem:[#allocation2 + $0xb4] sm:$0xf]  ;;  %v591_v34 = vor.u32 %v822_v25, %v588_v26 }
  0x28   :  { %483 = vmatpush.bf16.msra.mxu3 %v755_v42  ;;  %445 = vmatmul.bf16.vlgmr.msra.gmra.mxu0 %v973_v60  ;;  %v791_v28 = vor.u32 %v872_v20, %v788_v21  ;;  %v652_v29 = vld [vmem:[#allocation2 + $0xb8] sm:$0xf0]  ;;  %v854_v30 = vld [vmem:[#allocation2 + $0x134] sm:$0xf]  ;;  %v820_v37 = vld [vmem:[#allocation2 + $0x24] sm:$0xf] }
  0x29   :  { %489 = vmatpush.bf16.msrb.mxu0 %v623_v43  ;;  %458 = vmatmul.bf16.vlgmr.msra.gmra.mxu1 %v975_v62  ;;  %v716_v31 = vld [vmem:[#allocation2 + $0x138] sm:$0xf0]  ;;  %v870_v32 = vld [vmem:[#allocation2 + $0x1b4] sm:$0xf]  ;;  %v655_v35 = vor.u32 %v838_v27, %v652_v29  ;;  %v580_v38 = vld [vmem:[#allocation2 + $0x28] sm:$0xf0] }
  0x2a   :  { %502 = vmatpush.bf16.msrb.mxu1 %v687_v45  ;;  %471 = vmatmul.bf16.vlgmr.msra.gmra.mxu2 %v969_v56  ;;  %v780_v33 = vld [vmem:[#allocation2 + $0x1b8] sm:$0xf0]  ;;  %v719_v36 = vor.u32 %v854_v30, %v716_v31  ;;  %v836_v39 = vld [vmem:[#allocation2 + $0xa4] sm:$0xf]  ;;  %v644_v41 = vld [vmem:[#allocation2 + $0xa8] sm:$0xf0] }
  0x2b   :  { %515 = vmatpush.bf16.msrb.mxu2 %v751_v46  ;;  %484 = vmatmul.bf16.vlgmr.msra.gmra.mxu3 %v971_v59  ;;  %v783_v40 = vor.u32 %v870_v32, %v780_v33  ;;  %v852_v42 = vld [vmem:[#allocation2 + $0x124] sm:$0xf]  ;;  %v708_v43 = vld [vmem:[#allocation2 + $0x128] sm:$0xf0]  ;;  %v583_v46 = vor.u32 %v820_v37, %v580_v38  ;;  %v647_v47 = vor.u32 %v836_v39, %v644_v41  ;;  %v818_v49 = vld [vmem:[#allocation2 + $0x14] sm:$0xf] }
  0x2c   :  { %528 = vmatpush.bf16.msrb.mxu3 %v815_v52  ;;  %v868_v44 = vld [vmem:[#allocation2 + $0x1a4] sm:$0xf]  ;;  %v772_v45 = vld [vmem:[#allocation2 + $0x1a8] sm:$0xf0]  ;;  %v711_v48 = vor.u32 %v852_v42, %v708_v43  ;;  %v572_v50 = vld [vmem:[#allocation2 + $0x18] sm:$0xf0] }
  0x2d   :  { %490 = vmatpush.bf16.msrb.mxu0 %v615_v61  ;;  %v834_v51 = vld [vmem:[#allocation2 + $0x94] sm:$0xf]  ;;  %v775_v52 = vor.u32 %v868_v44, %v772_v45  ;;  %v636_v53 = vld [vmem:[#allocation2 + $0x98] sm:$0xf0]  ;;  %v575_v61 = vor.u32 %v818_v49, %v572_v50  ;;  %v816_v1 = vld [vmem:[#allocation2 + $0x4] sm:$0xf] }
  0x2e   :  { %503 = vmatpush.bf16.msrb.mxu1 %v679_v63  ;;  %v850_v54 = vld [vmem:[#allocation2 + $0x114] sm:$0xf]  ;;  %v700_v55 = vld [vmem:[#allocation2 + $0x118] sm:$0xf0]  ;;  %v639_v63 = vor.u32 %v834_v51, %v636_v53  ;;  %v564_v2 = vld [vmem:[#allocation2 + $0x8] sm:$0xf0] }
  0x2f   :  { %516 = vmatpush.bf16.msrb.mxu2 %v743_v0  ;;  %v866_v57 = vld [vmem:[#allocation2 + $0x194] sm:$0xf]  ;;  %v764_v58 = vld [vmem:[#allocation2 + $0x198] sm:$0xf0]  ;;  %v703_v0 = vor.u32 %v850_v54, %v700_v55  ;;  %v832_v3 = vld [vmem:[#allocation2 + $0x84] sm:$0xf] }
  0x30   :  { %529 = vmatpush.bf16.msrb.mxu3 %v807_v4  ;;  %v767_v4 = vor.u32 %v866_v57, %v764_v58  ;;  %v628_v5 = vld [vmem:[#allocation2 + $0x88] sm:$0xf0]  ;;  %v848_v6 = vld [vmem:[#allocation2 + $0x104] sm:$0xf]  ;;  %v97_v14 = vld [vmem:[%s993_s2] sm:$0x3] }
  0x31   :  { %491 = vmatpush.bf16.msrb.mxu0 %v607_v10  ;;  %v692_v7 = vld [vmem:[#allocation2 + $0x108] sm:$0xf0]  ;;  %v864_v8 = vld [vmem:[#allocation2 + $0x184] sm:$0xf]  ;;  %v567_v10 = vor.u32 %v816_v1, %v564_v2  ;;  %v99_v15 = vperm.slane %v97_v14, 0  ;;  %v100_v25 = vperm.slane %v97_v14, 1 }
  0x32   :  { %504 = vmatpush.bf16.msrb.mxu1 %v671_v11  ;;  %v756_v9 = vld [vmem:[#allocation2 + $0x188] sm:$0xf0]  ;;  %v631_v11 = vor.u32 %v832_v3, %v628_v5  ;;  %s939_s2 = smov [#allocation5]  }
  0x33   :  { %517 = vmatpush.bf16.msrb.mxu2 %v735_v12  ;;  %v695_v12 = vor.u32 %v848_v6, %v692_v7  ;;  %v759_v13 = vor.u32 %v864_v8, %v756_v9  ;;  %s548_s23 = sshll.u32 %s939_s2, 4  ;;  %s549_s23 = int_to_ptr.vmem [resolvable:$true] %s548_s23 }
  0x34   :  { %530 = vmatpush.bf16.msrb.mxu3 %v799_v16 }
  0x35   :  { %492 = vmatpush.bf16.msrb.mxu0 %v599_v22 }
  0x36   :  { %505 = vmatpush.bf16.msrb.mxu1 %v663_v23 }
  0x37   :  { %518 = vmatpush.bf16.msrb.mxu2 %v727_v24 }
  0x38   :  { %531 = vmatpush.bf16.msrb.mxu3 %v791_v28 }
  0x39   :  { %493 = vmatpush.bf16.msrb.mxu0 %v591_v34 }
  0x3a   :  { %506 = vmatpush.bf16.msrb.mxu1 %v655_v35 }
  0x3b   :  { %519 = vmatpush.bf16.msrb.mxu2 %v719_v36 }
  0x3c   :  { %532 = vmatpush.bf16.msrb.mxu3 %v783_v40 }
  0x3d   :  { %494 = vmatpush.bf16.msrb.mxu0 %v583_v46 }
  0x3e   :  { %507 = vmatpush.bf16.msrb.mxu1 %v647_v47 }
  0x3f   :  { %520 = vmatpush.bf16.msrb.mxu2 %v711_v48 }
  0x40   :  { %533 = vmatpush.bf16.msrb.mxu3 %v775_v52 }
  0x41   :  { %495 = vmatpush.bf16.msrb.mxu0 %v575_v61 }
  0x42   :  { %508 = vmatpush.bf16.msrb.mxu1 %v639_v63 }
  0x43   :  { %521 = vmatpush.bf16.msrb.mxu2 %v703_v0 }
  0x44   :  { %534 = vmatpush.bf16.msrb.mxu3 %v767_v4 }
  0x45   :  { %496 = vmatpush.bf16.msrb.mxu0 %v567_v10 }
  0x46   :  { %509 = vmatpush.bf16.msrb.mxu1 %v631_v11 }
  0x47   :  { %522 = vmatpush.bf16.msrb.mxu2 %v695_v12 }
  0x48   :  { %535 = vmatpush.bf16.msrb.mxu3 %v759_v13  ;;  %497 = vmatmul.bf16.vlgmr.msrb.gmra.mxu0 %v973_v60 }
  0x49   :  { %510 = vmatmul.bf16.vlgmr.msrb.gmra.mxu1 %v975_v62 }
  0x4a   :  { %523 = vmatmul.bf16.vlgmr.msrb.gmra.mxu2 %v969_v56 }
  0x4b   :  { %536 = vmatmul.bf16.vlgmr.msrb.gmra.mxu3 %v971_v59 }
  0xa5   :  { %v446_v16 = vpop.f32.mrf.mxu0 }
  0xa6   :  { %v447_v17 = vadd.f32 %v446_v16, %v99_v15  ;;  %v459_v18 = vpop.f32.mrf.mxu1 }
  0xa8   :  { %v460_v19 = vadd.f32 %v459_v18, %v447_v17 }
  0xad   :  { %v472_v20 = vpop.f32.mrf.mxu2  ;;  %v448_v60 = vpop.f32.mrf.mxu0 }
  0xae   :  { %v473_v21 = vadd.f32 %v472_v20, %v460_v19  ;;  %v485_v22 = vpop.f32.mrf.mxu3  ;;  %v461_v24 = vpop.f32.mrf.mxu1 }
  0xb0   :  { %v486_v23 = vadd.f32 %v485_v22, %v473_v21 }
  0xb2   :  { %541 = vst [vmem:[#allocation5] sm:$0xff] %v486_v23 }
  0xb5   :  { %v474_v62 = vpop.f32.mrf.mxu2 }
  0xb6   :  { %v487_v56 = vpop.f32.mrf.mxu3 }
  0xc5   :  { %v498_v59 = vpop.f32.mrf.mxu0 }
  0xc6   :  { %v499_v26 = vadd.f32 %v498_v59, %v100_v25  ;;  %v511_v27 = vpop.f32.mrf.mxu1 }
  0xc8   :  { %v512_v28 = vadd.f32 %v511_v27, %v499_v26 }
  0xcd   :  { %v524_v29 = vpop.f32.mrf.mxu2  ;;  %v500_v32 = vpop.f32.mrf.mxu0 }
  0xce   :  { %v525_v30 = vadd.f32 %v524_v29, %v512_v28  ;;  %v537_v31 = vpop.f32.mrf.mxu3  ;;  %v513_v33 = vpop.f32.mrf.mxu1 }
  0xd0   :  { %v538_v34 = vadd.f32 %v537_v31, %v525_v30 }
  0xd2   :  { %542 = vst [vmem:[#allocation5 + $0x8] sm:$0xff] %v538_v34 }
  0xd3   :  { %553 = dma.vmem_to_hbm [thread:$0]  %s549_s23, 256, %s551_s26, [#allocation4]  }
  0xd5   :  { %v526_v35 = vpop.f32.mrf.mxu2 }
  0xd6   :  { %v539_v36 = vpop.f32.mrf.mxu3 }
  0xd7   :  { %934 = dma.done.wait [#allocation4], 256  }
  0xd8   :  { %935 = vsyncadd [#allocation4], 4294967040 }
  0xd9   :  { %558 = vsyncpa [#allocation3], 1 }
  0xda   :  { %559 = vsyncpa [#allocation4], 1 }

</bundles_post_ra>
